<compile_context>
chip_gen: v7x
topology: tpu7x:2x2x1
jax: 0.10.0
libtpu: 0.0.40
codegen_flags: <defaults>
</compile_context>

<pallas_src>
import jax
import jax.numpy as jnp
from jax.experimental import pallas as pl
from jax.experimental.pallas import tpu as pltpu


def _round_up(x, m):
    return ((x + m - 1) // m) * m


def _choose_row_tile(M, tm):
    """Row tile: large for MXU efficiency, but split tiny inputs into >=2 grid
    steps so both v7x TensorCores get work."""
    tm = _round_up(max(8, min(tm, _round_up(M, 8))), 8)
    if _round_up(M, 8) <= tm and M >= 16:
        tm = _round_up((M + 1) // 2, 8)
    return tm


def _choose_hidden_tile(D, H, w_itemsize, budget_bytes):
    """Largest hidden tile (divisor of H, multiple of 128) whose w1+w2 blocks
    fit in budget_bytes, so weight DMA stays within VMEM even on v7x."""
    th = H
    while (2 * D * th * w_itemsize) > budget_bytes and th % 2 == 0 and (th // 2) % 128 == 0:
        th //= 2
    return th


def _default_vmem_limit():
    limit = 64 * 1024 * 1024
    try:  # cap below physical VMEM (v7x has 64 MiB vs 128 MiB on v5e/v6e)
        limit = min(limit, int(pltpu.get_tpu_info().vmem_capacity_bytes * 0.85))
    except Exception:
        pass
    return limit


def _layernorm_f32(z, gamma, beta):
    mean = jnp.mean(z, axis=-1, keepdims=True)
    zc = z - mean
    var = jnp.mean(zc * zc, axis=-1, keepdims=True)
    return zc * jax.lax.rsqrt(var + 1e-5) * gamma + beta


def _ffn_ln_fused_kernel(x_ref, w1_ref, b1_ref, w2_ref, b2_ref, g_ref, beta_ref,
                         o_ref):
    """Full hidden dim resident: single pass, no scratch, no reduction axis."""
    mm_dtype = w1_ref.dtype
    x_in = x_ref[...]
    x_mm = x_in if x_in.dtype == mm_dtype else x_in.astype(mm_dtype)

    # fc1 + bias + ReLU (dropout -> identity in eval mode), f32 accumulation.
    h = jnp.dot(x_mm, w1_ref[...], preferred_element_type=jnp.float32)
    h = jnp.maximum(h + b1_ref[...].astype(jnp.float32), 0.0)

    # fc2, fed to the MXU in the weight dtype.
    h_mm = h if mm_dtype == jnp.dtype(jnp.float32) else h.astype(mm_dtype)
    y = jnp.dot(h_mm, w2_ref[...], preferred_element_type=jnp.float32)

    z = x_in.astype(jnp.float32) + y + b2_ref[...].astype(jnp.float32)
    out = _layernorm_f32(z, g_ref[...].astype(jnp.float32),
                         beta_ref[...].astype(jnp.float32))
    o_ref[...] = out.astype(o_ref.dtype)


def _ffn_ln_acc_kernel(x_ref, w1_ref, b1_ref, w2_ref, b2_ref, g_ref, beta_ref,
                       o_ref, acc_ref):
    """Hidden-tiled variant: accumulate fc2 partials over the j axis in f32."""
    j = pl.program_id(1)
    mm_dtype = w1_ref.dtype

    @pl.when(j == 0)
    def _init():
        acc_ref[...] = jnp.zeros_like(acc_ref)

    x_in = x_ref[...]
    x_mm = x_in if x_in.dtype == mm_dtype else x_in.astype(mm_dtype)

    h = jnp.dot(x_mm, w1_ref[...], preferred_element_type=jnp.float32)
    h = jnp.maximum(h + b1_ref[...].astype(jnp.float32), 0.0)
    h_mm = h if mm_dtype == jnp.dtype(jnp.float32) else h.astype(mm_dtype)
    acc_ref[...] += jnp.dot(h_mm, w2_ref[...], preferred_element_type=jnp.float32)

    @pl.when(j == pl.num_programs(1) - 1)
    def _finalize():
        z = x_in.astype(jnp.float32) + acc_ref[...] + b2_ref[...].astype(jnp.float32)
        out = _layernorm_f32(z, g_ref[...].astype(jnp.float32),
                             beta_ref[...].astype(jnp.float32))
        o_ref[...] = out.astype(o_ref.dtype)


def poswise_ffn(x, params, *, tm=256, matmul_dtype=None,
                hidden_budget_bytes=16 * 1024 * 1024, vmem_limit_bytes=None):
    """x: (batch, n_nodes, seq_len, d_model) -> same shape."""
    B, N, S, D = x.shape
    H = params["w1"].shape[1]
    M = B * N * S

    w1, w2 = params["w1"], params["w2"]
    if matmul_dtype is not None:
        # convert weights once on the host; the kernel casts the x tile to match.
        w1 = w1.astype(matmul_dtype)
        w2 = w2.astype(matmul_dtype)
    b1, b2 = params["b1"], params["b2"]
    gamma, beta = params["gamma"], params["beta"]

    tm_eff = _choose_row_tile(M, tm)
    th = _choose_hidden_tile(D, H, jnp.dtype(w1.dtype).itemsize, hidden_budget_bytes)
    nj = H // th
    grid_rows = pl.cdiv(M, tm_eff)

    x2d = x.reshape(M, D)

    if vmem_limit_bytes is None:
        vmem_limit_bytes = _default_vmem_limit()

    bytes_io = 2 * M * D * x.dtype.itemsize
    bytes_w = sum(int(p.size) * p.dtype.itemsize
                  for p in (w1, b1, w2, b2, gamma, beta))
    cost = pl.CostEstimate(flops=4 * M * D * H,            # two matmuls
                           transcendentals=M,              # rsqrt per row
                           bytes_accessed=bytes_io + bytes_w)

    if nj == 1:
        # Fully fused: weights resident across all row tiles.
        grid_spec = pltpu.PrefetchScalarGridSpec(
            num_scalar_prefetch=0,
            grid=(grid_rows,),
            in_specs=[
                pl.BlockSpec((tm_eff, D), lambda i: (i, 0)),   # x rows
                pl.BlockSpec((D, H), lambda i: (0, 0)),        # w1
                pl.BlockSpec((1, H), lambda i: (0, 0)),        # b1
                pl.BlockSpec((H, D), lambda i: (0, 0)),        # w2
                pl.BlockSpec((1, D), lambda i: (0, 0)),        # b2
                pl.BlockSpec((1, D), lambda i: (0, 0)),        # ln gamma
                pl.BlockSpec((1, D), lambda i: (0, 0)),        # ln beta
            ],
            out_specs=pl.BlockSpec((tm_eff, D), lambda i: (i, 0)),
        )
        kernel = _ffn_ln_fused_kernel
        dims = ("parallel",)
    else:
        # Hidden-dim reduction axis (inner, "arbitrary") with f32 accumulator.
        grid_spec = pltpu.PrefetchScalarGridSpec(
            num_scalar_prefetch=0,
            grid=(grid_rows, nj),
            in_specs=[
                pl.BlockSpec((tm_eff, D), lambda i, j: (i, 0)),  # x rows
                pl.BlockSpec((D, th), lambda i, j: (0, j)),      # w1 cols
                pl.BlockSpec((1, th), lambda i, j: (0, j)),      # b1
                pl.BlockSpec((th, D), lambda i, j: (j, 0)),      # w2 rows
                pl.BlockSpec((1, D), lambda i, j: (0, 0)),       # b2
                pl.BlockSpec((1, D), lambda i, j: (0, 0)),       # ln gamma
                pl.BlockSpec((1, D), lambda i, j: (0, 0)),       # ln beta
            ],
            out_specs=pl.BlockSpec((tm_eff, D), lambda i, j: (i, 0)),
            scratch_shapes=[pltpu.VMEM((tm_eff, D), jnp.float32)],
        )
        kernel = _ffn_ln_acc_kernel
        dims = ("parallel", "arbitrary")

    out2d = pl.pallas_call(
        kernel,
        out_shape=jax.ShapeDtypeStruct((M, D), x.dtype),
        grid_spec=grid_spec,
        compiler_params=pltpu.CompilerParams(
            dimension_semantics=dims,
            vmem_limit_bytes=vmem_limit_bytes),
        cost_estimate=cost,
    )(x2d, w1, b1, w2, b2, gamma, beta)

    return out2d.reshape(B, N, S, D)


def init_params(key, d_model, dtype=jnp.float32):
    """Deterministic parameter init (shapes match the PyTorch module)."""
    h = 4 * d_model
    k1, k2 = jax.random.split(key)
    # nn.Linear stores weight as (out, in); we keep the math layout (in, out).
    w1 = jax.random.normal(k1, (d_model, h), dtype) * (1.0 / jnp.sqrt(d_model))
    b1 = jnp.zeros((1, h), dtype)
    w2 = jax.random.normal(k2, (h, d_model), dtype) * (1.0 / jnp.sqrt(h))
    b2 = jnp.zeros((1, d_model), dtype)
    gamma = jnp.ones((1, d_model), dtype)
    beta = jnp.zeros((1, d_model), dtype)
    return {"w1": w1, "b1": b1, "w2": w2, "b2": b2, "gamma": gamma, "beta": beta}


def reference(x, p):
    """Pure-JAX reference of the PyTorch forward (eval mode)."""
    h = jnp.maximum(x @ p["w1"] + p["b1"][0], 0.0)
    y = h @ p["w2"] + p["b2"][0]
    z = x + y
    mean = jnp.mean(z, axis=-1, keepdims=True)
    var = jnp.mean((z - mean) ** 2, axis=-1, keepdims=True)
    return (z - mean) * jax.lax.rsqrt(var + 1e-5) * p["gamma"][0] + p["beta"][0]


if __name__ == "__main__":
    # inputs: [batch_size, n_nodes, seq_len, d_model]
    B, N, S, D = 2, 4, 8, 128

    key = jax.random.PRNGKey(0)
    kx, kp = jax.random.split(key)
    x = jax.random.normal(kx, (B, N, S, D), jnp.float32)
    params = init_params(kp, D)

    ref = reference(x, params)

    # default config (fused single-pass kernel, >=2 row tiles, f32 matmuls)
    out = jax.block_until_ready(poswise_ffn(x, params))
    assert out.shape == x.shape
    assert jnp.allclose(out, ref, atol=1e-4, rtol=1e-4)

    # exercise the hidden-dim (reduction) accumulation path
    out_acc = jax.block_until_ready(
        poswise_ffn(x, params, hidden_budget_bytes=128 * 1024))
    assert jnp.allclose(out_acc, ref, atol=1e-4, rtol=1e-4)

    # exercise the ragged-row path (M=64 not divisible by tm=48; OOB writes masked)
    out_ragged = jax.block_until_ready(poswise_ffn(x, params, tm=48))
    assert jnp.allclose(out_ragged, ref, atol=1e-4, rtol=1e-4)

    # bf16 MXU path (weights converted once on host; f32 accumulation + f32 LN)
    out_bf16 = jax.block_until_ready(
        poswise_ffn(x, params, matmul_dtype=jnp.bfloat16))
    assert jnp.allclose(out_bf16, ref, atol=1e-1, rtol=1e-1)

    # TODO(synk): dropout is identity (eval mode); training-mode dropout would
    # need pltpu.prng_seed/prng_random_bits inside the kernel.
    print("KERNEL_OK")
</pallas_src>

<mosaic_0001>
module attributes {stable_mosaic.version = 11 : i64} {
  func.func @_ffn_ln_fused_kernel(%arg0: i32, %arg1: memref<32x128xf32, #tpu.memory_space<vmem>>, %arg2: memref<128x512xf32, #tpu.memory_space<vmem>>, %arg3: memref<1x512xf32, #tpu.memory_space<vmem>>, %arg4: memref<512x128xf32, #tpu.memory_space<vmem>>, %arg5: memref<1x128xf32, #tpu.memory_space<vmem>>, %arg6: memref<1x128xf32, #tpu.memory_space<vmem>>, %arg7: memref<1x128xf32, #tpu.memory_space<vmem>>, %arg8: memref<32x128xf32, #tpu.memory_space<vmem>>) attributes {dimension_semantics = [#tpu.dimension_semantics<parallel>], iteration_bounds = array<i64: 2>, scalar_prefetch = 0 : i64, scratch_operands = 0 : i64, tpu.core_type = #tpu.core_type<tc>, window_params = [{transform_indices = @transform_0, window_bounds = array<i64: 32, 128>}, {pipeline_mode = #tpu.pipeline_mode<synchronous>, transform_indices = @transform_1, window_bounds = array<i64: 128, 512>}, {pipeline_mode = #tpu.pipeline_mode<synchronous>, transform_indices = @transform_2, window_bounds = array<i64: 1, 512>}, {pipeline_mode = #tpu.pipeline_mode<synchronous>, transform_indices = @transform_3, window_bounds = array<i64: 512, 128>}, {pipeline_mode = #tpu.pipeline_mode<synchronous>, transform_indices = @transform_4, window_bounds = array<i64: 1, 128>}, {pipeline_mode = #tpu.pipeline_mode<synchronous>, transform_indices = @transform_5, window_bounds = array<i64: 1, 128>}, {pipeline_mode = #tpu.pipeline_mode<synchronous>, transform_indices = @transform_6, window_bounds = array<i64: 1, 128>}, {transform_indices = @transform_7, window_bounds = array<i64: 32, 128>}]} {
    %c0 = arith.constant 0 : index
    %c0_0 = arith.constant 0 : index
    %0 = vector.load %arg1[%c0, %c0_0] : memref<32x128xf32, #tpu.memory_space<vmem>>, vector<32x128xf32>
    %c0_1 = arith.constant 0 : index
    %c0_2 = arith.constant 0 : index
    %1 = vector.load %arg2[%c0_1, %c0_2] : memref<128x512xf32, #tpu.memory_space<vmem>>, vector<128x512xf32>
    %cst = arith.constant dense<0.000000e+00> : vector<32x512xf32>
    %2 = tpu.matmul %0, %1, %cst {dimension_numbers = #tpu.dot_dimension_numbers<[1], [0], [0], [1], [0, 0, 1, 1], [], []>} : vector<32x128xf32>, vector<128x512xf32>, vector<32x512xf32> -> vector<32x512xf32>
    %c0_3 = arith.constant 0 : index
    %c0_4 = arith.constant 0 : index
    %3 = vector.load %arg3[%c0_3, %c0_4] : memref<1x512xf32, #tpu.memory_space<vmem>>, vector<1x512xf32>
    %4 = vector.broadcast %3 : vector<1x512xf32> to vector<32x512xf32>
    %5 = arith.addf %2, %4 : vector<32x512xf32>
    %cst_5 = arith.constant 0.000000e+00 : f32
    %6 = vector.broadcast %cst_5 : f32 to vector<32x512xf32>
    %7 = arith.maximumf %5, %6 : vector<32x512xf32>
    %c0_6 = arith.constant 0 : index
    %c0_7 = arith.constant 0 : index
    %8 = vector.load %arg4[%c0_6, %c0_7] : memref<512x128xf32, #tpu.memory_space<vmem>>, vector<512x128xf32>
    %cst_8 = arith.constant dense<0.000000e+00> : vector<32x128xf32>
    %9 = tpu.matmul %7, %8, %cst_8 {dimension_numbers = #tpu.dot_dimension_numbers<[1], [0], [0], [1], [0, 0, 1, 1], [], []>} : vector<32x512xf32>, vector<512x128xf32>, vector<32x128xf32> -> vector<32x128xf32>
    %10 = arith.addf %0, %9 : vector<32x128xf32>
    %c0_9 = arith.constant 0 : index
    %c0_10 = arith.constant 0 : index
    %11 = vector.load %arg5[%c0_9, %c0_10] : memref<1x128xf32, #tpu.memory_space<vmem>>, vector<1x128xf32>
    %12 = vector.broadcast %11 : vector<1x128xf32> to vector<32x128xf32>
    %13 = arith.addf %10, %12 : vector<32x128xf32>
    %c0_11 = arith.constant 0 : index
    %c0_12 = arith.constant 0 : index
    %14 = vector.load %arg6[%c0_11, %c0_12] : memref<1x128xf32, #tpu.memory_space<vmem>>, vector<1x128xf32>
    %c0_13 = arith.constant 0 : index
    %c0_14 = arith.constant 0 : index
    %15 = vector.load %arg7[%c0_13, %c0_14] : memref<1x128xf32, #tpu.memory_space<vmem>>, vector<1x128xf32>
    %cst_15 = arith.constant dense<0.000000e+00> : vector<32xf32>
    %16 = vector.multi_reduction <add>, %13, %cst_15 [1] : vector<32x128xf32> to vector<32xf32>
    %17 = vector.shape_cast %16 : vector<32xf32> to vector<32x1xf32>
    %cst_16 = arith.constant 1.280000e+02 : f32
    %18 = vector.broadcast %cst_16 : f32 to vector<32x1xf32>
    %19 = arith.divf %17, %18 : vector<32x1xf32>
    %20 = vector.broadcast %19 : vector<32x1xf32> to vector<32x128xf32>
    %21 = arith.subf %13, %20 : vector<32x128xf32>
    %22 = arith.mulf %21, %21 : vector<32x128xf32>
    %cst_17 = arith.constant dense<0.000000e+00> : vector<32xf32>
    %23 = vector.multi_reduction <add>, %22, %cst_17 [1] : vector<32x128xf32> to vector<32xf32>
    %24 = vector.shape_cast %23 : vector<32xf32> to vector<32x1xf32>
    %cst_18 = arith.constant 1.280000e+02 : f32
    %25 = vector.broadcast %cst_18 : f32 to vector<32x1xf32>
    %26 = arith.divf %24, %25 : vector<32x1xf32>
    %cst_19 = arith.constant 9.99999974E-6 : f32
    %27 = vector.broadcast %cst_19 : f32 to vector<32x1xf32>
    %28 = arith.addf %26, %27 : vector<32x1xf32>
    %29 = math.rsqrt %28 : vector<32x1xf32>
    %30 = vector.broadcast %29 : vector<32x1xf32> to vector<32x128xf32>
    %31 = arith.mulf %21, %30 : vector<32x128xf32>
    %32 = vector.broadcast %14 : vector<1x128xf32> to vector<32x128xf32>
    %33 = arith.mulf %31, %32 : vector<32x128xf32>
    %34 = vector.broadcast %15 : vector<1x128xf32> to vector<32x128xf32>
    %35 = arith.addf %33, %34 : vector<32x128xf32>
    %c0_20 = arith.constant 0 : index
    %c0_21 = arith.constant 0 : index
    %36 = vector.load %arg8[%c0_20, %c0_21] : memref<32x128xf32, #tpu.memory_space<vmem>>, vector<32x128xf32>
    tpu.vector_store %arg8[%c0_20, %c0_21], %35 {strides = array<i32>} : memref<32x128xf32, #tpu.memory_space<vmem>>, vector<32x128xf32>,
    return
  }
  func.func @transform_0(%arg0: i32) -> (i32, i32) {
    %c0_i32 = arith.constant 0 : i32
    %c0_i32_0 = arith.constant 0 : i32
    return %arg0, %c0_i32 : i32, i32
  }
  func.func @transform_1(%arg0: i32) -> (i32, i32) {
    %c0_i32 = arith.constant 0 : i32
    %c0_i32_0 = arith.constant 0 : i32
    %c0_i32_1 = arith.constant 0 : i32
    return %c0_i32, %c0_i32_0 : i32, i32
  }
  func.func @transform_2(%arg0: i32) -> (i32, i32) {
    %c0_i32 = arith.constant 0 : i32
    %c0_i32_0 = arith.constant 0 : i32
    %c0_i32_1 = arith.constant 0 : i32
    return %c0_i32, %c0_i32_0 : i32, i32
  }
  func.func @transform_3(%arg0: i32) -> (i32, i32) {
    %c0_i32 = arith.constant 0 : i32
    %c0_i32_0 = arith.constant 0 : i32
    %c0_i32_1 = arith.constant 0 : i32
    return %c0_i32, %c0_i32_0 : i32, i32
  }
  func.func @transform_4(%arg0: i32) -> (i32, i32) {
    %c0_i32 = arith.constant 0 : i32
    %c0_i32_0 = arith.constant 0 : i32
    %c0_i32_1 = arith.constant 0 : i32
    return %c0_i32, %c0_i32_0 : i32, i32
  }
  func.func @transform_5(%arg0: i32) -> (i32, i32) {
    %c0_i32 = arith.constant 0 : i32
    %c0_i32_0 = arith.constant 0 : i32
    %c0_i32_1 = arith.constant 0 : i32
    return %c0_i32, %c0_i32_0 : i32, i32
  }
  func.func @transform_6(%arg0: i32) -> (i32, i32) {
    %c0_i32 = arith.constant 0 : i32
    %c0_i32_0 = arith.constant 0 : i32
    %c0_i32_1 = arith.constant 0 : i32
    return %c0_i32, %c0_i32_0 : i32, i32
  }
  func.func @transform_7(%arg0: i32) -> (i32, i32) {
    %c0_i32 = arith.constant 0 : i32
    %c0_i32_0 = arith.constant 0 : i32
    return %arg0, %c0_i32 : i32, i32
  }
}

</mosaic_0001>

<bundles_post_ra>
// kernel: tpu_custom_call.1
= control target key start
LH: loop header
LB: loop body
LE: loop exit
PB: predicated region body
PF: predicated region fallthrough
CT: control target
= control target key end

     0   :  { %12 = vsyncpa [#allocation3], 0  ;;  %s2193_s0 = inlined_call_operand.hbm [shape: f32[64,128], index: 0, kind: input, shape index: {}]   ;;  %s2194_s1 = inlined_call_operand.hbm [shape: f32[128,512], index: 1, kind: input, shape index: {}]   ;;  %s2195_s2 = inlined_call_operand.hbm [shape: f32[1,512], index: 2, kind: input, shape index: {}]   ;;  %s2196_s3 = inlined_call_operand.hbm [shape: f32[512,128], index: 3, kind: input, shape index: {}]   ;;  %s2197_s4 = inlined_call_operand.hbm [shape: f32[1,128], index: 4, kind: input, shape index: {}]   ;;  %s2198_s5 = inlined_call_operand.hbm [shape: f32[1,128], index: 5, kind: input, shape index: {}]   ;;  %s2199_s6 = inlined_call_operand.hbm [shape: f32[1,128], index: 6, kind: input, shape index: {}]   ;;  %s2200_s7 = inlined_call_operand.hbm [shape: f32[64,128], index: 7, kind: output, shape index: {}]  }
   0x1   :  { %14 = vsyncpa [#allocation3 + $0x1], 0 }
   0x2   :  { %15 = vsyncpa [#allocation6], 0 }
   0x3   :  { %16 = vsyncpa [#allocation9], 0 }
   0x4   :  { %17 = vsyncpa [#allocation12], 0 }
   0x5   :  { %18 = vsyncpa [#allocation4], 0 }
   0x6   :  { %20 = vsyncpa [#allocation4 + $0x1], 0  ;;  %s1828_s24 = smov 0   ;;  %s1830_s25 = smov 0  }
   0x7   :  { %s1832_s26 = smov 0   ;;  %s1834_s27 = smov 0  }
   0x8 LB: > { %s1773_s28 = smov [#allocation5]   ;;  %s1849_s30 = sadd.s32 4294967295, %s1771_s27   ;;  %s1771_s27 = sphi %s1834_s27, %s2228_s27   ;;  %s1767_s26 = sphi %s1832_s26, %s2227_s26   ;;  %s1763_s25 = sphi %s1830_s25, %s2226_s25   ;;  %s1759_s24 = sphi %s1828_s24, %s2225_s24  }
   0x9   : > { %s221_s29 = sshll.u32 %s1773_s28, 4  ;;  %p1127_p0 = scmp.ge.s32.totalorder %s1771_s27, 1  ;;  %s1854_s29 = int_to_ptr.vmem [resolvable:$true] %s221_s29 }
   0xa   : > { %p2201_p1 = scmp.eq.s32.totalorder %s1849_s30, 0  ;;  %p209_p2 = scmp.lt.s32.totalorder %s1771_s27, 3 }
   0xb   : > { %s1774_s9 = smov [#allocation8]   ;;  %s1775_s12 = smov [#allocation11]  }
   0xc   : > { %p1856_p3 = pnand %p1127_p0, %p209_p2  ;;  %s245_s10 = sshll.u32 %s1774_s9, 4  ;;  %s1869_s10 = int_to_ptr.vmem [resolvable:$true] %s245_s10 }
   0xd   : > { %s1871_s13 = sshll.u32 %s1775_s12, 4  ;;  %s1495_s16 = scalar_lea.hbm %s2194_s1, 8192  ;;  %s271_s13 = int_to_ptr.vmem [resolvable:$true] %s1871_s13 }
   0xe   : > { %s2205_s8 = scalar_select %p1856_p3, 1, 0 }
   0xf   : > { %p1401_p5 = pneg %p1856_p3  ;;  %p1496_p7 = scmp.ne.s32.totalorder %s2194_s1, %s1495_s16 }
  0x10   : > { %p1502_p11 = scmp.lt.u32.totalorder %s1495_s16, %s2194_s1 }
  0x11   : > { %p1865_p6 = pnand %p1401_p5, %p2201_p1 }
  0x13   : > { %p1881_p8 = pneg %p1865_p6 }
  0x15   : > { %p1498_p9 = pnand %p1881_p8, %p1496_p7 }
  0x17   : > { %p1499_p10 = pneg %p1498_p9 }
  0x19   : > { %p1504_p12 = pnand %p1502_p11, %p1499_p10 }
  0x1b   : > { %1507 = shalt.err (!%p1504_p12)
}
  0x1c   : > { %s1508_s22 = scalar_lea.vmem %s1854_s29, 8192  ;;  %p1516_p5 = scmp.lt.s32.totalorder %s1854_s29, %s1854_s29 }
  0x1d   : > { %p1509_p13 = scmp.ne.s32.totalorder %s1854_s29, %s1508_s22  ;;  %p1517_p4 = scmp.lt.s32.totalorder %s1508_s22, %s1508_s22 }
  0x1f   : > { %p1511_p0 = pnand %p1509_p13, %p1881_p8  ;;  %p1518_p7 = por %p1517_p4, %p1516_p5 }
  0x21   : > { %p1512_p2 = pneg %p1511_p0 }
  0x23   : > { %p1519_p9 = pnand %p1518_p7, %p1512_p2 }
  0x25   : > { %1522 = shalt.err (!%p1519_p9)
}
  0x26   : > { %s1776_s23 = smov 512   ;;  %s1777_s28 = smov 32  }
  0x27   : > { %1404 = dma.hbm_to_vmem [thread:$0]  (!%p1865_p6), %s2194_s1, 8192, %s1854_s29, [#allocation6], %s1776_s23, %s1776_s23, %s1777_s28  }
  0x28   : > { %s1523_s16 = scalar_lea.hbm %s2196_s3, 8192 }
  0x29   : > { %p1524_p4 = scmp.ne.s32.totalorder %s2196_s3, %s1523_s16  ;;  %p1530_p12 = scmp.lt.u32.totalorder %s1523_s16, %s2196_s3 }
  0x2b   : > { %p1526_p10 = pnand %p1524_p4, %p1881_p8 }
  0x2d   : > { %p1527_p11 = pneg %p1526_p10 }
  0x2f   : > { %p1532_p13 = pnand %p1530_p12, %p1527_p11 }
  0x31   : > { %1535 = shalt.err (!%p1532_p13)
}
  0x32   : > { %s1536_s29 = scalar_lea.vmem %s1869_s10, 8192  ;;  %p1544_p7 = scmp.lt.s32.totalorder %s1869_s10, %s1869_s10 }
  0x33   : > { %p1537_p0 = scmp.ne.s32.totalorder %s1869_s10, %s1536_s29  ;;  %p1545_p9 = scmp.lt.s32.totalorder %s1536_s29, %s1536_s29 }
  0x35   : > { %p1539_p2 = pnand %p1537_p0, %p1881_p8  ;;  %p1546_p4 = por %p1545_p9, %p1544_p7 }
  0x37   : > { %p1540_p5 = pneg %p1539_p2 }
  0x39   : > { %p1547_p10 = pnand %p1546_p4, %p1540_p5 }
  0x3b   : > { %1550 = shalt.err (!%p1547_p10)
}
  0x3c   : > { %s2203_s22 = smov 128   ;;  %s1779_s23 = smov 8  }
  0x3d   : > { %1410 = dma.hbm_to_vmem [thread:$0]  (!%p1865_p6), %s2196_s3, 8192, %s1869_s10, [#allocation9], %s2203_s22, %s2203_s22, %s1779_s23  }
  0x3e   : > { %s1551_s15 = scalar_lea.hbm %s2198_s5, 16 }
  0x3f   : > { %p1552_p11 = scmp.ne.s32.totalorder %s2198_s5, %s1551_s15  ;;  %p1558_p0 = scmp.lt.u32.totalorder %s1551_s15, %s2198_s5 }
  0x41   : > { %p1554_p12 = pnand %p1552_p11, %p1881_p8 }
  0x43   : > { %p1555_p13 = pneg %p1554_p12 }
  0x45   : > { %p1560_p2 = pnand %p1558_p0, %p1555_p13 }
  0x47   : > { %1563 = shalt.err (!%p1560_p2)
}
  0x48   : > { %s1564_s21 = scalar_lea.vmem %s271_s13, 16  ;;  %s1571_s10 = scalar_lea.vmem %s271_s13, 32 }
  0x49   : > { %p1565_p5 = scmp.ne.s32.totalorder %s271_s13, %s1564_s21  ;;  %p1572_p4 = scmp.lt.s32.totalorder %s271_s13, %s271_s13 }
  0x4a   : > { %p1573_p10 = scmp.lt.s32.totalorder %s1571_s10, %s1564_s21 }
  0x4b   : > { %p1567_p7 = pnand %p1565_p5, %p1881_p8 }
  0x4c   : > { %p1574_p1 = por %p1573_p10, %p1572_p4 }
  0x4d   : > { %p1568_p9 = pneg %p1567_p7 }
  0x4f   : > { %p1575_p3 = pnand %p1574_p1, %p1568_p9 }
  0x51   : > { %1578 = shalt.err (!%p1575_p3)
}
  0x52   : > { %1416 = dma.hbm_to_vmem [thread:$0]  (!%p1865_p6), %s2198_s5, 16, %s271_s13, [#allocation12]  }
  0x53   : > { %s1780_s9 = smov [#allocation7]   ;;  %s1781_s14 = smov [#allocation10]  }
  0x54   : > { %s235_s12 = sshll.u32 %s1780_s9, 4  ;;  %s259_s15 = sshll.u32 %s1781_s14, 4  ;;  %s236_s12 = int_to_ptr.vmem [resolvable:$true] %s235_s12  ;;  %s260_s15 = int_to_ptr.vmem [resolvable:$true] %s259_s15 }
  0x55   : > { %s1579_s18 = scalar_lea.hbm %s2195_s2, 64 }
  0x56   : > { %p1580_p1 = scmp.ne.s32.totalorder %s2195_s2, %s1579_s18  ;;  %p1586_p12 = scmp.lt.u32.totalorder %s1579_s18, %s2195_s2 }
  0x58   : > { %p1582_p3 = pnand %p1580_p1, %p1881_p8 }
  0x5a   : > { %p1583_p11 = pneg %p1582_p3 }
  0x5c   : > { %p1588_p13 = pnand %p1586_p12, %p1583_p11 }
  0x5e   : > { %1591 = shalt.err (!%p1588_p13)
}
  0x5f   : > { %s1592_s13 = scalar_lea.vmem %s236_s12, 64  ;;  %p1600_p7 = scmp.lt.s32.totalorder %s236_s12, %s236_s12 }
  0x60   : > { %p1593_p0 = scmp.ne.s32.totalorder %s236_s12, %s1592_s13  ;;  %p1601_p9 = scmp.lt.s32.totalorder %s1592_s13, %s1592_s13 }
  0x62   : > { %p1595_p2 = pnand %p1593_p0, %p1881_p8  ;;  %p1602_p4 = por %p1601_p9, %p1600_p7 }
  0x64   : > { %p1596_p5 = pneg %p1595_p2 }
  0x66   : > { %p1603_p10 = pnand %p1602_p4, %p1596_p5 }
  0x68   : > { %1606 = shalt.err (!%p1603_p10)
}
  0x69   : > { %1407 = dma.hbm_to_vmem [thread:$0]  (!%p1865_p6), %s2195_s2, 64, %s236_s12, [#allocation6]  }
  0x6a   : > { %s1607_s17 = scalar_lea.hbm %s2197_s4, 16 }
  0x6b   : > { %p1608_p1 = scmp.ne.s32.totalorder %s2197_s4, %s1607_s17  ;;  %p1614_p12 = scmp.lt.u32.totalorder %s1607_s17, %s2197_s4 }
  0x6d   : > { %p1610_p3 = pnand %p1608_p1, %p1881_p8 }
  0x6f   : > { %p1611_p11 = pneg %p1610_p3 }
  0x71   : > { %p1616_p13 = pnand %p1614_p12, %p1611_p11 }
  0x73   : > { %1619 = shalt.err (!%p1616_p13)
}
  0x74   : > { %s1620_s29 = scalar_lea.vmem %s260_s15, 16  ;;  %s1627_s12 = scalar_lea.vmem %s260_s15, 32 }
  0x75   : > { %p1621_p0 = scmp.ne.s32.totalorder %s260_s15, %s1620_s29  ;;  %p1628_p7 = scmp.lt.s32.totalorder %s260_s15, %s260_s15 }
  0x76   : > { %p1629_p9 = scmp.lt.s32.totalorder %s1627_s12, %s1620_s29 }
  0x77   : > { %p1623_p2 = pnand %p1621_p0, %p1881_p8 }
  0x78   : > { %p1630_p4 = por %p1629_p9, %p1628_p7 }
  0x79   : > { %p1624_p5 = pneg %p1623_p2 }
  0x7b   : > { %p1631_p10 = pnand %p1630_p4, %p1624_p5 }
  0x7d   : > { %1634 = shalt.err (!%p1631_p10)
}
  0x7e   : > { %1413 = dma.hbm_to_vmem [thread:$0]  (!%p1865_p6), %s2197_s4, 16, %s260_s15, [#allocation9]  }
  0x7f   : > { %s1782_s9 = smov [#allocation13]   ;;  %s1635_s18 = scalar_lea.hbm %s2199_s6, 16 }
  0x80   : > { %s281_s14 = sshll.u32 %s1782_s9, 4  ;;  %p1636_p1 = scmp.ne.s32.totalorder %s2199_s6, %s1635_s18  ;;  %s282_s14 = int_to_ptr.vmem [resolvable:$true] %s281_s14 }
  0x81   : > { %p1642_p12 = scmp.lt.u32.totalorder %s1635_s18, %s2199_s6 }
  0x82   : > { %p1638_p3 = pnand %p1636_p1, %p1881_p8 }
  0x84   : > { %p1639_p11 = pneg %p1638_p3 }
  0x86   : > { %p1644_p13 = pnand %p1642_p12, %p1639_p11 }
  0x88   : > { %1647 = shalt.err (!%p1644_p13)
}
  0x89   : > { %s1648_s15 = scalar_lea.vmem %s282_s14, 16  ;;  %s1655_s12 = scalar_lea.vmem %s282_s14, 32 }
  0x8a   : > { %p1649_p0 = scmp.ne.s32.totalorder %s282_s14, %s1648_s15  ;;  %p1656_p7 = scmp.lt.s32.totalorder %s282_s14, %s282_s14 }
  0x8b   : > { %p1657_p9 = scmp.lt.s32.totalorder %s1655_s12, %s1648_s15 }
  0x8c   : > { %p1651_p2 = pnand %p1649_p0, %p1881_p8 }
  0x8d   : > { %p1658_p4 = por %p1657_p9, %p1656_p7 }
  0x8e   : > { %p1652_p5 = pneg %p1651_p2 }
  0x90   : > { %p1659_p10 = pnand %p1658_p4, %p1652_p5 }
  0x92   : > { %1662 = shalt.err (!%p1659_p10)
}
  0x93   : > { %1419 = dma.hbm_to_vmem [thread:$0]  (!%p1865_p6), %s2199_s6, 16, %s282_s14, [#allocation12]  }
  0x94   : > { %s1126_s19 = sadd.s32 4294967294, %s1771_s27   ;;  %s2003_s11 = sadd.s32 1, %s1771_s27  }
  0x95   : > { %s30_s9 = ssub.s32 %s1771_s27, %s2003_s11  ;;  %s33_s16 = sadd.s32 1, %s1767_s26 }
  0x96   : > { %p31_p8 = scmp.eq.s32.totalorder %s30_s9, 0  ;;  %p40_p1 = scmp.ne.s32.totalorder %s1767_s26, %s1763_s25 }
  0x97   : > { %p41_p3 = scmp.eq.s32.totalorder %s1771_s27, 0  ;;  %p46_p11 = scmp.ne.s32.totalorder %s1763_s25, %s1759_s24 }
  0x98   : > { %s2014_s17 = scalar_select %p31_p8, %s1767_s26, %s33_s16  }
  0x99   : > { %p2016_p12 = por %p41_p3, %p40_p1  ;;  %p2209_p13 = scmp.eq.s32.totalorder %s1849_s30, 0 }
  0x9a   : > { %p196_p0 = scmp.eq.s32.totalorder %s1849_s30, 1  ;;  %p202_p2 = scmp.eq.s32.totalorder %s1126_s19, 1 }
  0x9b   : > { %p2022_p6 = por %p2209_p13, %p46_p11  ;;  %p1434_p5 = scmp.lt.s32.totalorder %s1771_s27, 2 }
  0x9c   : > { %s292_s20 = sand.u32 1, %s1767_s26   ;;  %p2029_p7 = por %p196_p0, %p40_p1 }
  0x9d   : > { %p2033_p9 = por %p202_p2, %p46_p11  ;;  %s1135_s29 = sshll.u32 %s292_s20, 5 }
  0x9e   : > { %s2211_s21 = scalar_select %p2029_p7, 1, 0 }
  0x9f   : > { %s2212_s10 = scalar_select %p2033_p9, 1, 0 }
  0xa0   : > { %s1155_s15 = sshll.u32 %s1771_s27, 9  ;;  %s296_s19 = scalar_lea.vmem [#allocation2], %s1135_s29 }
  0xa1   : > { %s2041_s28 = scalar_lea.hbm %s2193_s0, %s1155_s15  ;;  %s303_s9 = sshll.u32 %s296_s19, 4  ;;  %s2043_s9 = int_to_ptr.vmem [resolvable:$true] %s303_s9 }
  0xa2   : > { %p2047_p4 = pnand %p1434_p5, %p2016_p12  ;;  %s2051_s22 = scalar_lea.sflag [#allocation3], %s292_s20 }
  0xa3   : > { %s1663_s12 = scalar_lea.hbm %s2041_s28, 512  ;;  %s1668_s18 = scalar_lea.hbm %s2193_s0, 1024 }
  0xa4   : > { %p1664_p10 = scmp.ne.s32.totalorder %s2041_s28, %s1663_s12  ;;  %p1665_p8 = pneg %p2047_p4 }
  0xa5   : > { %p1669_p11 = scmp.lt.u32.totalorder %s2041_s28, %s2193_s0  ;;  %p1670_p12 = scmp.lt.u32.totalorder %s1668_s18, %s1663_s12 }
  0xa6   : > { %p1666_p1 = pnand %p1665_p8, %p1664_p10  ;;  %p1672_p0 = scmp.lt.u32.totalorder %s1663_s12, %s2041_s28 }
  0xa7   : > { %p1671_p13 = por %p1670_p12, %p1669_p11 }
  0xa8   : > { %p1667_p3 = pneg %p1666_p1 }
  0xa9   : > { %p1673_p2 = por %p1672_p0, %p1671_p13 }
  0xab   : > { %p1674_p5 = pnand %p1673_p2, %p1667_p3 }
  0xad   : > { %1677 = shalt.err (!%p1674_p5)
}
  0xae   : > { %s1678_s20 = scalar_lea.vmem %s2043_s9, 512  ;;  %s1783_s29 = smov [#allocation2]  }
  0xaf   : > { %p1679_p10 = scmp.ne.s32.totalorder %s2043_s9, %s1678_s20  ;;  %s1683_s15 = sshll.u32 %s1783_s29, 4  ;;  %s1684_s15 = int_to_ptr.vmem [resolvable:$false] %s1683_s15 }
  0xb0   : > { %s1685_s13 = scalar_lea.vmem %s1684_s15, 1024  ;;  %p1686_p7 = scmp.lt.s32.totalorder %s2043_s9, %s1684_s15 }
  0xb1   : > { %p1681_p1 = pnand %p1679_p10, %p1665_p8  ;;  %p1687_p11 = scmp.lt.s32.totalorder %s1685_s13, %s1678_s20 }
  0xb3   : > { %p1682_p9 = pneg %p1681_p1  ;;  %p1688_p12 = por %p1687_p11, %p1686_p7 }
  0xb5   : > { %p1689_p13 = pnand %p1688_p12, %p1682_p9 }
  0xb7   : > { %1692 = shalt.err (!%p1689_p13)
}
  0xb8   : > { %s2214_s12 = smov 128   ;;  %p2215_p8 = scmp.ne.s32.totalorder %s2205_s8, 0 }
  0xb9   : > { %1423 = dma.hbm_to_vmem [thread:$0]  (!%p2047_p4), %s2041_s28, 512, %s2043_s9, %s2051_s22, %s2214_s12, %s2214_s12, %s1779_s23  }
  0xba   : > { %315 = sbr.rel (%p2215_p8) target bundleno = 1018 (0x3fa), region = 48  ;;  %s2085_s18 = sand.u32 (!%p2215_p8), 1, %s1763_s25  }
  0xbb   : > { %s1139_s19 = sshll.u32 (!%p2215_p8), %s2085_s18, 5  ;;  %s318_s20 = scalar_lea.sflag (!%p2215_p8), [#allocation3], %s2085_s18 }
  0xbc   : > { %s2091_s16 = scalar_lea.vmem (!%p2215_p8), [#allocation2], %s1139_s19 }
  0xc1   : > { %1738 = dma.done.wait (%p2022_p6), %s318_s20, 512  }
  0xc2   : > { %1740 = vsyncadd (%p2022_p6), %s318_s20, 4294966784  ;;  %p2216_p7 = scmp.eq.s32.totalorder %s1849_s30, 0 }
  0xc4   : > { %1742 = dma.done.wait (%p2216_p7), [#allocation6], 8256   ;;  %p2217_p9 = pmov %p2216_p7 }
  0xc5   : > { %p2218_p4 = pmov %p2216_p7 }
  0xc6   : > { %1744 = vsyncadd (%p2217_p9), [#allocation6], 4294959040 }
  0xc7   : > { %1746 = dma.done.wait (%p2218_p4), [#allocation9], 8208   ;;  %p2219_p3 = pmov %p2218_p4 }
  0xc9   : > { %1748 = vsyncadd (%p2219_p3), [#allocation9], 4294959088  ;;  %p2220_p0 = pmov %p2219_p3 }
  0xcb   : > { %1750 = dma.done.wait (%p2220_p0), [#allocation12], 32   ;;  %p2221_p2 = pmov %p2220_p0 }
  0xcc   : > { %v1784_v0 = vmov 0.0   ;;  %v383_v1 = vld [vmem:[#allocation5 + $0x8] sm:$0xff]  ;;  %v385_v3 = vld [vmem:[#allocation5 + $0x18] sm:$0xff]  ;;  %v382_v6 = vld [vmem:[#allocation5] sm:$0xff]  ;;  %s375_s8 = scalar_lea.vmem [#allocation14], %s1139_s19  ;;  %s1156_s22 = sshll.u32 %s1849_s30, 9 }
  0xcd   : > { %1752 = vsyncadd (%p2221_p2), [#allocation12], 4294967264  ;;  %532 = vmatprep.mubr.f32.mxu0 %v1784_v0  ;;  %621 = vmatprep.mubr.f32.mxu1 %v1784_v0  ;;  %v387_v2 = vld [vmem:[#allocation5 + $0x28] sm:$0xff]  ;;  %v389_v5 = vld [vmem:[#allocation5 + $0x38] sm:$0xff]  ;;  %s996_s23 = sshll.u32 %s375_s8, 4  ;;  %s2147_s9 = scalar_lea.hbm %s2200_s7, %s1156_s22  ;;  %s2149_s23 = int_to_ptr.vmem [resolvable:$true] %s996_s23 }
  0xce   : > { %v1245_v4 = vpack.c.bf16 %v387_v2, %v383_v1  ;;  %v386_v7 = vld [vmem:[#allocation5 + $0x20] sm:$0xff]  ;;  %v1277_v8 = vpack.c.bf16 %v389_v5, %v385_v3  ;;  %v384_v10 = vld [vmem:[#allocation5 + $0x10] sm:$0xff]  ;;  %v391_v12 = vld [vmem:[#allocation5 + $0x48] sm:$0xff]  ;;  %s983_s29 = scalar_lea.sflag [#allocation4], %s2085_s18  ;;  %s1693_s15 = scalar_lea.vmem %s2149_s23, 512 }
  0xcf   : > { %v1247_v9 = vpack.c.bf16 %v386_v7, %v382_v6  ;;  %v388_v11 = vld [vmem:[#allocation5 + $0x30] sm:$0xff]  ;;  %v395_v14 = vld [vmem:[#allocation5 + $0x68] sm:$0xff]  ;;  %v393_v15 = vld [vmem:[#allocation5 + $0x58] sm:$0xff]  ;;  %p1694_p6 = scmp.ne.s32.totalorder %s2149_s23, %s1693_s15  ;;  %p2222_p5 = scmp.ne.s32.totalorder %s2211_s21, 0 }
  0xd0   : > { %1246 = vmatprep.subr.bf16.mxu0 %v1245_v4  ;;  %v1279_v13 = vpack.c.bf16 %v388_v11, %v384_v10  ;;  %v397_v16 = vld [vmem:[#allocation5 + $0x78] sm:$0xff]  ;;  %1278 = vmatprep.subr.bf16.mxu1 %v1277_v8  ;;  %v1249_v17 = vpack.c.bf16 %v395_v14, %v391_v12  ;;  %v390_v19 = vld [vmem:[#allocation5 + $0x40] sm:$0xff]  ;;  %v392_v21 = vld [vmem:[#allocation5 + $0x50] sm:$0xff]  ;;  %s1785_s30 = smov [#allocation14]  }
  0xd1   : > { %1248 = vmatpush1.bf16.msra.mxu0 %v1247_v9  ;;  %v1281_v18 = vpack.c.bf16 %v397_v16, %v393_v15  ;;  %v394_v20 = vld [vmem:[#allocation5 + $0x60] sm:$0xff]  ;;  %v396_v23 = vld [vmem:[#allocation5 + $0x70] sm:$0xff]  ;;  %v399_v24 = vld [vmem:[#allocation5 + $0x88] sm:$0xff]  ;;  %p1695_p10 = pnand %p1694_p6, %p2222_p5  ;;  %s1697_s13 = sshll.u32 %s1785_s30, 4  ;;  %s1698_s13 = int_to_ptr.vmem [resolvable:$false] %s1697_s13 }
  0xd2   : > { %1280 = vmatpush1.bf16.msra.mxu1 %v1279_v13  ;;  %v1251_v22 = vpack.c.bf16 %v394_v20, %v390_v19  ;;  %v403_v25 = vld [vmem:[#allocation5 + $0xa8] sm:$0xff]  ;;  %1250 = vmatprep.subr.bf16.mxu0 %v1249_v17  ;;  %v1283_v26 = vpack.c.bf16 %v396_v23, %v392_v21  ;;  %v401_v28 = vld [vmem:[#allocation5 + $0x98] sm:$0xff]  ;;  %v398_v30 = vld [vmem:[#allocation5 + $0x80] sm:$0xff]  ;;  %s1699_s12 = scalar_lea.vmem %s1698_s13, 1024  ;;  %p1700_p11 = scmp.lt.s32.totalorder %s2149_s23, %s1698_s13 }
  0xd3   : > { %1282 = vmatprep.subr.bf16.mxu1 %v1281_v18  ;;  %v1253_v27 = vpack.c.bf16 %v403_v25, %v399_v24  ;;  %v405_v29 = vld [vmem:[#allocation5 + $0xb8] sm:$0xff]  ;;  %v402_v32 = vld [vmem:[#allocation5 + $0xa0] sm:$0xff]  ;;  %v400_v33 = vld [vmem:[#allocation5 + $0x90] sm:$0xff]  ;;  %p1696_p1 = pneg %p1695_p10  ;;  %p1701_p12 = scmp.lt.s32.totalorder %s1699_s12, %s1693_s15 }
  0xd4   : > { %v1285_v31 = vpack.c.bf16 %v405_v29, %v401_v28  ;;  %v404_v34 = vld [vmem:[#allocation5 + $0xb0] sm:$0xff]  ;;  %v1255_v35 = vpack.c.bf16 %v402_v32, %v398_v30  ;;  %v407_v36 = vld [vmem:[#allocation5 + $0xc8] sm:$0xff]  ;;  %v409_v38 = vld [vmem:[#allocation5 + $0xd8] sm:$0xff] }
  0xd5   : > { %1252 = vmatpush1.bf16.msra.mxu0 %v1251_v22  ;;  %v411_v37 = vld [vmem:[#allocation5 + $0xe8] sm:$0xff]  ;;  %v1287_v39 = vpack.c.bf16 %v404_v34, %v400_v33  ;;  %v413_v41 = vld [vmem:[#allocation5 + $0xf8] sm:$0xff]  ;;  %v406_v42 = vld [vmem:[#allocation5 + $0xc0] sm:$0xff]  ;;  %p1702_p13 = por %p1701_p12, %p1700_p11 }
  0xd6   : > { %1284 = vmatpush1.bf16.msra.mxu1 %v1283_v26  ;;  %1254 = vmatprep.subr.bf16.mxu0 %v1253_v27  ;;  %v1257_v40 = vpack.c.bf16 %v411_v37, %v407_v36  ;;  %v410_v43 = vld [vmem:[#allocation5 + $0xe0] sm:$0xff]  ;;  %v1289_v44 = vpack.c.bf16 %v413_v41, %v409_v38  ;;  %v408_v45 = vld [vmem:[#allocation5 + $0xd0] sm:$0xff]  ;;  %v415_v47 = vld [vmem:[#allocation5 + $0x108] sm:$0xff] }
  0xd7   : > { %1286 = vmatprep.subr.bf16.mxu1 %v1285_v31  ;;  %v412_v46 = vld [vmem:[#allocation5 + $0xf0] sm:$0xff]  ;;  %v419_v48 = vld [vmem:[#allocation5 + $0x128] sm:$0xff]  ;;  %v417_v49 = vld [vmem:[#allocation5 + $0x118] sm:$0xff]  ;;  %v1259_v51 = vpack.c.bf16 %v410_v43, %v406_v42  ;;  %p1703_p8 = pnand %p1702_p13, %p1696_p1 }
  0xd8   : > { %v421_v50 = vld [vmem:[#allocation5 + $0x138] sm:$0xff]  ;;  %v1291_v52 = vpack.c.bf16 %v412_v46, %v408_v45  ;;  %v1261_v53 = vpack.c.bf16 %v419_v48, %v415_v47  ;;  %v414_v54 = vld [vmem:[#allocation5 + $0x100] sm:$0xff]  ;;  %v416_v56 = vld [vmem:[#allocation5 + $0x110] sm:$0xff] }
  0xd9   : > { %1256 = vmatpush1.bf16.msra.mxu0 %v1255_v35  ;;  %v418_v55 = vld [vmem:[#allocation5 + $0x120] sm:$0xff]  ;;  %v1293_v57 = vpack.c.bf16 %v421_v50, %v417_v49  ;;  %v420_v58 = vld [vmem:[#allocation5 + $0x130] sm:$0xff]  ;;  %v423_v59 = vld [vmem:[#allocation5 + $0x148] sm:$0xff] }
  0xda   : > { %1288 = vmatpush1.bf16.msra.mxu1 %v1287_v39  ;;  %1258 = vmatprep.subr.bf16.mxu0 %v1257_v40  ;;  %v427_v60 = vld [vmem:[#allocation5 + $0x168] sm:$0xff]  ;;  %v425_v61 = vld [vmem:[#allocation5 + $0x158] sm:$0xff]  ;;  %v1263_v63 = vpack.c.bf16 %v418_v55, %v414_v54  ;;  %v1295_v1 = vpack.c.bf16 %v420_v58, %v416_v56  ;;  %v422_v3 = vld [vmem:[#allocation5 + $0x140] sm:$0xff] }
  0xdb   : > { %1290 = vmatprep.subr.bf16.mxu1 %v1289_v44  ;;  %v429_v62 = vld [vmem:[#allocation5 + $0x178] sm:$0xff]  ;;  %v1265_v2 = vpack.c.bf16 %v427_v60, %v423_v59  ;;  %v426_v4 = vld [vmem:[#allocation5 + $0x160] sm:$0xff]  ;;  %v424_v5 = vld [vmem:[#allocation5 + $0x150] sm:$0xff] }
  0xdc   : > { %v1297_v6 = vpack.c.bf16 %v429_v62, %v425_v61  ;;  %v428_v7 = vld [vmem:[#allocation5 + $0x170] sm:$0xff]  ;;  %v431_v8 = vld [vmem:[#allocation5 + $0x188] sm:$0xff]  ;;  %v433_v10 = vld [vmem:[#allocation5 + $0x198] sm:$0xff]  ;;  %v1267_v12 = vpack.c.bf16 %v426_v4, %v422_v3 }
  0xdd   : > { %1260 = vmatpush1.bf16.msra.mxu0 %v1259_v51  ;;  %v435_v9 = vld [vmem:[#allocation5 + $0x1a8] sm:$0xff]  ;;  %v437_v11 = vld [vmem:[#allocation5 + $0x1b8] sm:$0xff]  ;;  %v1299_v13 = vpack.c.bf16 %v428_v7, %v424_v5  ;;  %v430_v15 = vld [vmem:[#allocation5 + $0x180] sm:$0xff] }
  0xde   : > { %1292 = vmatpush1.bf16.msra.mxu1 %v1291_v52  ;;  %1262 = vmatprep.subr.bf16.mxu0 %v1261_v53  ;;  %v1269_v14 = vpack.c.bf16 %v435_v9, %v431_v8  ;;  %v434_v16 = vld [vmem:[#allocation5 + $0x1a0] sm:$0xff]  ;;  %v432_v17 = vld [vmem:[#allocation5 + $0x190] sm:$0xff]  ;;  %v1301_v18 = vpack.c.bf16 %v437_v11, %v433_v10  ;;  %v439_v20 = vld [vmem:[#allocation5 + $0x1c8] sm:$0xff] }
  0xdf   : > { %1294 = vmatprep.subr.bf16.mxu1 %v1293_v57  ;;  %v436_v19 = vld [vmem:[#allocation5 + $0x1b0] sm:$0xff]  ;;  %v443_v21 = vld [vmem:[#allocation5 + $0x1e8] sm:$0xff]  ;;  %v441_v22 = vld [vmem:[#allocation5 + $0x1d8] sm:$0xff]  ;;  %v1271_v24 = vpack.c.bf16 %v434_v16, %v430_v15 }
  0xe0   : > { %v445_v23 = vld [vmem:[#allocation5 + $0x1f8] sm:$0xff]  ;;  %v1303_v25 = vpack.c.bf16 %v436_v19, %v432_v17  ;;  %v1273_v26 = vpack.c.bf16 %v443_v21, %v439_v20  ;;  %v438_v27 = vld [vmem:[#allocation5 + $0x1c0] sm:$0xff]  ;;  %v440_v29 = vld [vmem:[#allocation5 + $0x1d0] sm:$0xff] }
  0xe1   : > { %1264 = vmatpush1.bf16.msra.mxu0 %v1263_v63  ;;  %v442_v28 = vld [vmem:[#allocation5 + $0x1e0] sm:$0xff]  ;;  %v1305_v30 = vpack.c.bf16 %v445_v23, %v441_v22  ;;  %v444_v31 = vld [vmem:[#allocation5 + $0x1f0] sm:$0xff]  ;;  %v2118_v59 = vld [vmem:[%s2091_s16 + $0x8] sm:$0xff] }
  0xe2   : > { %1296 = vmatpush1.bf16.msra.mxu1 %v1295_v1  ;;  %1266 = vmatprep.subr.bf16.mxu0 %v1265_v2  ;;  %v678_v32 = vld [vmem:[#allocation8 + $0x80] sm:$0xff]  ;;  %v679_v33 = vld [vmem:[#allocation8 + $0x88] sm:$0xff]  ;;  %v1275_v36 = vpack.c.bf16 %v442_v28, %v438_v27  ;;  %v1307_v37 = vpack.c.bf16 %v444_v31, %v440_v29  ;;  %v680_v44 = vld [vmem:[#allocation8 + $0x90] sm:$0xff] }
  0xe3   : > { %1298 = vmatprep.subr.bf16.mxu1 %v1297_v6  ;;  %v710_v34 = vld [vmem:[#allocation8 + $0x180] sm:$0xff]  ;;  %v711_v35 = vld [vmem:[#allocation8 + $0x188] sm:$0xff]  ;;  %v1309_v38 = vpack.c.bf16 %v679_v33, %v678_v32  ;;  %v681_v45 = vld [vmem:[#allocation8 + $0x98] sm:$0xff] }
  0xe4   : > { %v1341_v39 = vpack.c.bf16 %v711_v35, %v710_v34  ;;  %v662_v40 = vld [vmem:[#allocation8] sm:$0xff]  ;;  %v663_v41 = vld [vmem:[#allocation8 + $0x8] sm:$0xff]  ;;  %v712_v47 = vld [vmem:[#allocation8 + $0x190] sm:$0xff]  ;;  %v1313_v51 = vpack.c.bf16 %v681_v45, %v680_v44 }
  0xe5   : > { %1268 = vmatpush1.bf16.msra.mxu0 %v1267_v12  ;;  %v694_v42 = vld [vmem:[#allocation8 + $0x100] sm:$0xff]  ;;  %v695_v43 = vld [vmem:[#allocation8 + $0x108] sm:$0xff]  ;;  %v713_v48 = vld [vmem:[#allocation8 + $0x198] sm:$0xff]  ;;  %v1311_v49 = vpack.c.bf16 %v663_v41, %v662_v40 }
  0xe6   : > { %1300 = vmatpush1.bf16.msra.mxu1 %v1299_v13  ;;  %1270 = vmatprep.subr.bf16.mxu0 %v1269_v14  ;;  %v2112_v46 = vld [vmem:[%s2091_s16] sm:$0xff]  ;;  %v1343_v50 = vpack.c.bf16 %v695_v43, %v694_v42  ;;  %v664_v52 = vld [vmem:[#allocation8 + $0x10] sm:$0xff]  ;;  %v1345_v55 = vpack.c.bf16 %v713_v48, %v712_v47  ;;  %v683_v58 = vld [vmem:[#allocation8 + $0xa8] sm:$0xff] }
  0xe7   : > { %1302 = vmatprep.subr.bf16.mxu1 %v1301_v18  ;;  %v665_v53 = vld [vmem:[#allocation8 + $0x18] sm:$0xff]  ;;  %v696_v54 = vld [vmem:[#allocation8 + $0x110] sm:$0xff]  ;;  %v682_v57 = vld [vmem:[#allocation8 + $0xa0] sm:$0xff] }
  0xe8   : > { %v697_v56 = vld [vmem:[#allocation8 + $0x118] sm:$0xff]  ;;  %v714_v60 = vld [vmem:[#allocation8 + $0x1a0] sm:$0xff]  ;;  %v715_v61 = vld [vmem:[#allocation8 + $0x1a8] sm:$0xff]  ;;  %v1315_v62 = vpack.c.bf16 %v665_v53, %v664_v52  ;;  %v1317_v1 = vpack.c.bf16 %v683_v58, %v682_v57 }
  0xe9   : > { %1272 = vmatpush1.bf16.msra.mxu0 %v1271_v24  ;;  %v1347_v63 = vpack.c.bf16 %v697_v56, %v696_v54  ;;  %v666_v2 = vld [vmem:[#allocation8 + $0x20] sm:$0xff]  ;;  %v667_v3 = vld [vmem:[#allocation8 + $0x28] sm:$0xff]  ;;  %v1349_v5 = vpack.c.bf16 %v715_v61, %v714_v60  ;;  %v684_v7 = vld [vmem:[#allocation8 + $0xb0] sm:$0xff] }
  0xea   : > { %1304 = vmatpush1.bf16.msra.mxu1 %v1303_v25  ;;  %1274 = vmatprep.subr.bf16.mxu0 %v1273_v26  ;;  %v698_v4 = vld [vmem:[#allocation8 + $0x120] sm:$0xff]  ;;  %v699_v6 = vld [vmem:[#allocation8 + $0x128] sm:$0xff]  ;;  %v685_v8 = vld [vmem:[#allocation8 + $0xb8] sm:$0xff]  ;;  %v1319_v12 = vpack.c.bf16 %v667_v3, %v666_v2 }
  0xeb   : > { %1306 = vmatprep.subr.bf16.mxu1 %v1305_v30  ;;  %v2125_v9 = vld [vmem:[%s2091_s16 + $0x10] sm:$0xff]  ;;  %v717_v11 = vld [vmem:[#allocation8 + $0x1b8] sm:$0xff]  ;;  %v1351_v13 = vpack.c.bf16 %v699_v6, %v698_v4  ;;  %v1321_v14 = vpack.c.bf16 %v685_v8, %v684_v7  ;;  %v686_v20 = vld [vmem:[#allocation8 + $0xc0] sm:$0xff] }
  0xec   : > { %v716_v10 = vld [vmem:[#allocation8 + $0x1b0] sm:$0xff]  ;;  %v669_v16 = vld [vmem:[#allocation8 + $0x38] sm:$0xff]  ;;  %v687_v21 = vld [vmem:[#allocation8 + $0xc8] sm:$0xff] }
  0xed   : > { %1276 = vmatpush1.bf16.msra.mxu0 %v1275_v36  ;;  %v668_v15 = vld [vmem:[#allocation8 + $0x30] sm:$0xff]  ;;  %v1353_v18 = vpack.c.bf16 %v717_v11, %v716_v10  ;;  %v701_v19 = vld [vmem:[#allocation8 + $0x138] sm:$0xff]  ;;  %v718_v23 = vld [vmem:[#allocation8 + $0x1c0] sm:$0xff]  ;;  %v1325_v27 = vpack.c.bf16 %v687_v21, %v686_v20  ;;  %v448_v10 = vlaneseq }
  0xee   : > { %1308 = vmatpush1.bf16.msra.mxu1 %v1307_v37  ;;  %1310 = vmatprep.subr.bf16.mxu0 %v1309_v38  ;;  %v700_v17 = vld [vmem:[#allocation8 + $0x130] sm:$0xff]  ;;  %v719_v24 = vld [vmem:[#allocation8 + $0x1c8] sm:$0xff]  ;;  %v1323_v25 = vpack.c.bf16 %v669_v16, %v668_v15  ;;  %v670_v28 = vld [vmem:[#allocation8 + $0x40] sm:$0xff] }
  0xef   : > { %1342 = vmatprep.subr.bf16.mxu1 %v1341_v39  ;;  %v2132_v22 = vld [vmem:[%s2091_s16 + $0x18] sm:$0xff]  ;;  %v1355_v26 = vpack.c.bf16 %v701_v19, %v700_v17  ;;  %v671_v29 = vld [vmem:[#allocation8 + $0x48] sm:$0xff]  ;;  %v702_v30 = vld [vmem:[#allocation8 + $0x140] sm:$0xff]  ;;  %v1357_v31 = vpack.c.bf16 %v719_v24, %v718_v23  ;;  %v449_v11 = vshrl.u32 %v448_v10, 7 }
  0xf0   : > { %533 = vmatmul.mubr.f32.vlgmr.msra.gmra.mrb[0].mxu0 %v2112_v46  ;;  %v703_v32 = vld [vmem:[#allocation8 + $0x148] sm:$0xff]  ;;  %v688_v33 = vld [vmem:[#allocation8 + $0xd0] sm:$0xff]  ;;  %v689_v34 = vld [vmem:[#allocation8 + $0xd8] sm:$0xff]  ;;  %v1327_v36 = vpack.c.bf16 %v671_v29, %v670_v28 }
  0xf1   : > { %622 = vmatmul.mubr.f32.vlgmr.msra.gmra.mrb[0].mxu1 %v2112_v46  ;;  %538 = vmatprep.mubr.f32.mxu0 %v1784_v0  ;;  %v720_v35 = vld [vmem:[#allocation8 + $0x1d0] sm:$0xff]  ;;  %v1359_v37 = vpack.c.bf16 %v703_v32, %v702_v30  ;;  %v1329_v38 = vpack.c.bf16 %v689_v34, %v688_v33  ;;  %v673_v40 = vld [vmem:[#allocation8 + $0x58] sm:$0xff]  ;;  %v690_v44 = vld [vmem:[#allocation8 + $0xe0] sm:$0xff]  ;;  %v454_v15 = vsub.s32 1, %v449_v11  ;;  %v462_v16 = vsub.s32 3, %v449_v11 }
  0xf2   : > { %627 = vmatprep.mubr.f32.mxu1 %v1784_v0  ;;  %1312 = vmatpush3.bf16.msra.mxu0 %v1311_v49  ;;  %v672_v39 = vld [vmem:[#allocation8 + $0x50] sm:$0xff]  ;;  %v705_v43 = vld [vmem:[#allocation8 + $0x158] sm:$0xff]  ;;  %v691_v45 = vld [vmem:[#allocation8 + $0xe8] sm:$0xff] }
  0xf3   : > { %1344 = vmatpush3.bf16.msra.mxu1 %v1343_v50  ;;  %1314 = vmatprep.subr.bf16.mxu0 %v1313_v51  ;;  %v704_v41 = vld [vmem:[#allocation8 + $0x150] sm:$0xff]  ;;  %v722_v47 = vld [vmem:[#allocation8 + $0x1e0] sm:$0xff]  ;;  %v723_v48 = vld [vmem:[#allocation8 + $0x1e8] sm:$0xff]  ;;  %v1331_v49 = vpack.c.bf16 %v673_v40, %v672_v39  ;;  %v1333_v51 = vpack.c.bf16 %v691_v45, %v690_v44 }
  0xf4   : > { %539 = vmatmul.mubr.f32.gmra.mrb[2].mxu0 %v2118_v59  ;;  %1346 = vmatprep.subr.bf16.mxu1 %v1345_v55  ;;  %v1363_v50 = vpack.c.bf16 %v705_v43, %v704_v41  ;;  %v1365_v52 = vpack.c.bf16 %v723_v48, %v722_v47  ;;  %v674_v53 = vld [vmem:[#allocation8 + $0x60] sm:$0xff]  ;;  %v675_v54 = vld [vmem:[#allocation8 + $0x68] sm:$0xff]  ;;  %v692_v60 = vld [vmem:[#allocation8 + $0xf0] sm:$0xff] }
  0xf5   : > { %628 = vmatmul.mubr.f32.gmra.mrb[2].mxu1 %v2118_v59  ;;  %544 = vmatprep.mubr.f32.mxu0 %v1784_v0  ;;  %v706_v55 = vld [vmem:[#allocation8 + $0x160] sm:$0xff]  ;;  %v1335_v56 = vpack.c.bf16 %v675_v54, %v674_v53  ;;  %v707_v57 = vld [vmem:[#allocation8 + $0x168] sm:$0xff]  ;;  %v693_v61 = vld [vmem:[#allocation8 + $0xf8] sm:$0xff] }
  0xf6   : > { %633 = vmatprep.mubr.f32.mxu1 %v1784_v0  ;;  %1316 = vmatpush3.bf16.msra.mxu0 %v1315_v62  ;;  %v1367_v58 = vpack.c.bf16 %v707_v57, %v706_v55  ;;  %v724_v62 = vld [vmem:[#allocation8 + $0x1f0] sm:$0xff]  ;;  %v677_v3 = vld [vmem:[#allocation8 + $0x78] sm:$0xff] }
  0xf7   : > { %1348 = vmatpush3.bf16.msra.mxu1 %v1347_v63  ;;  %1318 = vmatprep.subr.bf16.mxu0 %v1317_v1  ;;  %v1337_v63 = vpack.c.bf16 %v693_v61, %v692_v60  ;;  %v725_v1 = vld [vmem:[#allocation8 + $0x1f8] sm:$0xff]  ;;  %v676_v2 = vld [vmem:[#allocation8 + $0x70] sm:$0xff] }
  0xf8   : > { %545 = vmatmul.mubr.f32.gmra.mrb[4].mxu0 %v2125_v9  ;;  %1350 = vmatprep.subr.bf16.mxu1 %v1349_v5  ;;  %v1369_v4 = vpack.c.bf16 %v725_v1, %v724_v62  ;;  %v1339_v5 = vpack.c.bf16 %v677_v3, %v676_v2  ;;  %v708_v6 = vld [vmem:[#allocation8 + $0x170] sm:$0xff]  ;;  %v709_v7 = vld [vmem:[#allocation8 + $0x178] sm:$0xff] }
  0xf9   : > { %634 = vmatmul.mubr.f32.gmra.mrb[4].mxu1 %v2125_v9  ;;  %550 = vmatprep.mubr.f32.mxu0 %v1784_v0  ;;  %v1371_v8 = vpack.c.bf16 %v709_v7, %v708_v6 }
  0xfa   : > { %639 = vmatprep.mubr.f32.mxu1 %v1784_v0  ;;  %1320 = vmatpush3.bf16.msra.mxu0 %v1319_v12  ;;  %v721_v0 = vld [vmem:[#allocation8 + $0x1d8] sm:$0xff]  ;;  %v450_v12 = vsub.s32 0, %v449_v11 }
  0xfb   : > { %1352 = vmatpush3.bf16.msra.mxu1 %v1351_v13  ;;  %1322 = vmatprep.subr.bf16.mxu0 %v1321_v14  ;;  %v1361_v42 = vpack.c.bf16 %v721_v0, %v720_v35  ;;  %v446_v13 = vld [vmem:[#allocation7] sm:$0xf]  ;;  %v458_v14 = vsub.s32 2, %v449_v11 }
  0xfc   : > { %551 = vmatmul.mubr.f32.gmra.mrb[6].mxu0 %v2132_v22  ;;  %1354 = vmatprep.subr.bf16.mxu1 %v1353_v18  ;;  %v451_v17 = vrot.slane %v446_v13, %v450_v12  ;;  %v455_v19 = vrot.slane %v446_v13, %v454_v15  ;;  %v463_v20 = vrot.slane %v446_v13, %v462_v16 }
  0xfd   : > { %640 = vmatmul.mubr.f32.gmra.mrb[6].mxu1 %v2132_v22  ;;  %v459_v18 = vrot.slane %v446_v13, %v458_v14 }
  0xfe   : > { %1324 = vmatpush3.bf16.msra.mxu0 %v1323_v25 }
  0xff   : > { %1356 = vmatpush3.bf16.msra.mxu1 %v1355_v26  ;;  %1326 = vmatprep.subr.bf16.mxu0 %v1325_v27 }
 0x100   : > { %1358 = vmatprep.subr.bf16.mxu1 %v1357_v31 }
 0x102   : > { %1328 = vmatpush3.bf16.msra.mxu0 %v1327_v36 }
 0x103   : > { %1360 = vmatpush3.bf16.msra.mxu1 %v1359_v37  ;;  %1330 = vmatprep.subr.bf16.mxu0 %v1329_v38 }
 0x104   : > { %1362 = vmatprep.subr.bf16.mxu1 %v1361_v42 }
 0x106   : > { %1332 = vmatpush3.bf16.msra.mxu0 %v1331_v49 }
 0x107   : > { %1364 = vmatpush3.bf16.msra.mxu1 %v1363_v50  ;;  %1334 = vmatprep.subr.bf16.mxu0 %v1333_v51 }
 0x108   : > { %1366 = vmatprep.subr.bf16.mxu1 %v1365_v52 }
 0x10a   : > { %1336 = vmatpush3.bf16.msra.mxu0 %v1335_v56 }
 0x10b   : > { %1368 = vmatpush3.bf16.msra.mxu1 %v1367_v58  ;;  %1338 = vmatprep.subr.bf16.mxu0 %v1337_v63 }
 0x10c   : > { %1370 = vmatprep.subr.bf16.mxu1 %v1369_v4 }
 0x10e   : > { %1340 = vmatpush3.bf16.msra.mxu0 %v1339_v5 }
 0x10f   : > { %1372 = vmatpush3.bf16.msra.mxu1 %v1371_v8 }
 0x1c3   : > { %v534_v21 = vpop.f32.mrb[0].mxu0 }
 0x1c4   : > { %v535_v23 = vadd.f32 %v534_v21, %v451_v17  ;;  %v623_v24 = vpop.f32.mrb[0].mxu1  ;;  %v536_v25 = vpop.f32.mrb[1].mxu0  ;;  %v1147_v21 = vld [vmem:[#allocation10] ss:$0 sm:$0xff] }
 0x1c5   : > { %v624_v26 = vadd.f32 %v623_v24, %v459_v18  ;;  %v537_v27 = vadd.f32 %v536_v25, %v455_v19  ;;  %v625_v28 = vpop.f32.mrb[1].mxu1 }
 0x1c6   : > { %v626_v29 = vadd.f32 %v625_v28, %v463_v20  ;;  %v646_v32 = vmax.f32 %v535_v23, 0.0 }
 0x1c7   : > { %v647_v30 = vmax.f32 %v537_v27, 0.0  ;;  %v540_v31 = vpop.f32.mrb[2].mxu0  ;;  %v648_v36 = vmax.f32 %v624_v26, 0.0 }
 0x1c8   : > { %v649_v33 = vmax.f32 %v626_v29, 0.0  ;;  %v541_v34 = vadd.f32 %v540_v31, %v451_v17  ;;  %v629_v35 = vpop.f32.mrb[2].mxu1  ;;  %v542_v0 = vpop.f32.mrb[3].mxu0 }
 0x1c9   : > { %v630_v37 = vadd.f32 %v629_v35, %v459_v18  ;;  %v543_v38 = vadd.f32 %v542_v0, %v455_v19  ;;  %v631_v39 = vpop.f32.mrb[3].mxu1  ;;  %790 = vmatprep.mubr.f32.mxu0 %v647_v30 }
 0x1ca   : > { %v632_v40 = vadd.f32 %v631_v39, %v463_v20  ;;  %875 = vmatprep.mubr.f32.mxu1 %v649_v33  ;;  %791 = vmatmul.mubr.f32.vlgmr.msra.gmra.mrb[8].mxu0 %v646_v32  ;;  %v650_v43 = vmax.f32 %v541_v34, 0.0 }
 0x1cb   : > { %v651_v41 = vmax.f32 %v543_v38, 0.0  ;;  %876 = vmatmul.mubr.f32.vlgmr.msra.gmra.mrb[8].mxu1 %v648_v36  ;;  %v546_v42 = vpop.f32.mrb[4].mxu0  ;;  %v652_v49 = vmax.f32 %v630_v37, 0.0 }
 0x1cc   : > { %v653_v44 = vmax.f32 %v632_v40, 0.0  ;;  %v547_v45 = vadd.f32 %v546_v42, %v451_v17  ;;  %v635_v47 = vpop.f32.mrb[4].mxu1  ;;  %v548_v48 = vpop.f32.mrb[5].mxu0 }
 0x1cd   : > { %v636_v50 = vadd.f32 %v635_v47, %v459_v18  ;;  %v549_v51 = vadd.f32 %v548_v48, %v455_v19  ;;  %v637_v52 = vpop.f32.mrb[5].mxu1  ;;  %795 = vmatprep.mubr.f32.mxu0 %v651_v41 }
 0x1ce   : > { %v638_v53 = vadd.f32 %v637_v52, %v463_v20  ;;  %880 = vmatprep.mubr.f32.mxu1 %v653_v44  ;;  %796 = vmatmul.mubr.f32.gmra.mrb[10].mxu0 %v650_v43  ;;  %v654_v56 = vmax.f32 %v547_v45, 0.0 }
 0x1cf   : > { %v655_v54 = vmax.f32 %v549_v51, 0.0  ;;  %881 = vmatmul.mubr.f32.gmra.mrb[10].mxu1 %v652_v49  ;;  %v552_v55 = vpop.f32.mrb[6].mxu0  ;;  %v656_v62 = vmax.f32 %v636_v50, 0.0 }
 0x1d0   : > { %v657_v57 = vmax.f32 %v638_v53, 0.0  ;;  %v553_v58 = vadd.f32 %v552_v55, %v451_v17  ;;  %v641_v60 = vpop.f32.mrb[6].mxu1  ;;  %v554_v61 = vpop.f32.mrb[7].mxu0 }
 0x1d1   : > { %v642_v63 = vadd.f32 %v641_v60, %v459_v18  ;;  %v555_v1 = vadd.f32 %v554_v61, %v455_v19  ;;  %v643_v2 = vpop.f32.mrb[7].mxu1  ;;  %800 = vmatprep.mubr.f32.mxu0 %v655_v54 }
 0x1d2   : > { %v644_v3 = vadd.f32 %v643_v2, %v463_v20  ;;  %885 = vmatprep.mubr.f32.mxu1 %v657_v57  ;;  %801 = vmatmul.mubr.f32.gmra.mrb[12].mxu0 %v654_v56  ;;  %v658_v5 = vmax.f32 %v553_v58, 0.0 }
 0x1d3   : > { %v659_v4 = vmax.f32 %v555_v1, 0.0  ;;  %886 = vmatmul.mubr.f32.gmra.mrb[12].mxu1 %v656_v62  ;;  %v660_v7 = vmax.f32 %v642_v63, 0.0 }
 0x1d4   : > { %v661_v6 = vmax.f32 %v644_v3, 0.0 }
 0x1d5   : > { %805 = vmatprep.mubr.f32.mxu0 %v659_v4 }
 0x1d6   : > { %890 = vmatprep.mubr.f32.mxu1 %v661_v6  ;;  %806 = vmatmul.mubr.f32.gmra.mrb[14].mxu0 %v658_v5 }
 0x1d7   : > { %891 = vmatmul.mubr.f32.gmra.mrb[14].mxu1 %v660_v7 }
 0x29d   : > { %v1189_v8 = vpop.f32.mrb[8].mxu0 }
 0x29e   : > { %v1233_v10 = vpop.f32.mrb[8].mxu1  ;;  %v1190_v11 = vpop.f32.mrb[9].mxu0 }
 0x29f   : > { %v1191_v12 = vadd.f32 %v1190_v11, %v1189_v8  ;;  %v1234_v13 = vpop.f32.mrb[9].mxu1 }
 0x2a0   : > { %v1235_v14 = vadd.f32 %v1234_v13, %v1233_v10  ;;  %v1148_v10 = vld [vmem:[#allocation11] ss:$0 sm:$0xff]  ;;  %v1149_v13 = vld [vmem:[#allocation13] ss:$0 sm:$0xff] }
 0x2a1   : > { %v1192_v15 = vpop.f32.mrb[10].mxu0 }
 0x2a2   : > { %v878_v16 = vadd.f32 %v1235_v14, %v1191_v12  ;;  %v1236_v17 = vpop.f32.mrb[10].mxu1  ;;  %v1193_v18 = vpop.f32.mrb[11].mxu0 }
 0x2a3   : > { %v1194_v19 = vadd.f32 %v1193_v18, %v1192_v15  ;;  %v1237_v20 = vpop.f32.mrb[11].mxu1 }
 0x2a4   : > { %v1238_v23 = vadd.f32 %v1237_v20, %v1236_v17  ;;  %v896_v24 = vadd.f32 %v878_v16, %v2112_v46 }
 0x2a5   : > { %v1195_v25 = vpop.f32.mrb[12].mxu0 }
 0x2a6   : > { %v883_v26 = vadd.f32 %v1238_v23, %v1194_v19  ;;  %v1239_v27 = vpop.f32.mrb[12].mxu1  ;;  %v1196_v28 = vpop.f32.mrb[13].mxu0  ;;  %v907_v29 = vadd.f32 %v1147_v21, %v896_v24 }
 0x2a7   : > { %v1197_v30 = vadd.f32 %v1196_v28, %v1195_v25  ;;  %v1240_v31 = vpop.f32.mrb[13].mxu1 }
 0x2a8   : > { %v1241_v32 = vadd.f32 %v1240_v31, %v1239_v27  ;;  %913 = vadd.xlane.f32.xlu0 %v907_v29  ;;  %v897_v33 = vadd.f32 %v883_v26, %v2118_v59 }
 0x2a9   : > { %v1198_v34 = vpop.f32.mrb[14].mxu0 }
 0x2aa   : > { %v888_v35 = vadd.f32 %v1241_v32, %v1197_v30  ;;  %v1242_v0 = vpop.f32.mrb[14].mxu1  ;;  %v1199_v36 = vpop.f32.mrb[15].mxu0  ;;  %v908_v37 = vadd.f32 %v1147_v21, %v897_v33 }
 0x2ab   : > { %v1200_v38 = vadd.f32 %v1199_v36, %v1198_v34  ;;  %v1243_v39 = vpop.f32.mrb[15].mxu1 }
 0x2ac   : > { %v1244_v40 = vadd.f32 %v1243_v39, %v1242_v0  ;;  %915 = vadd.xlane.f32.xlu0 %v908_v37  ;;  %v898_v46 = vadd.f32 %v888_v35, %v2125_v9 }
 0x2ae   : > { %v893_v41 = vadd.f32 %v1244_v40, %v1200_v38  ;;  %v909_v42 = vadd.f32 %v1147_v21, %v898_v46 }
 0x2b0   : > { %917 = vadd.xlane.f32.xlu1 %v909_v42  ;;  %v899_v43 = vadd.f32 %v893_v41, %v2132_v22 }
 0x2b2   : > { %v910_v44 = vadd.f32 %v1147_v21, %v899_v43 }
 0x2b4   : > { %919 = vadd.xlane.f32.xlu1 %v910_v44 }
 0x335   : > { %v914_v45 = vpop.xlane.xlu0 %913 }
 0x336   : > { %v922_v59 = vmul.f32 0.0078125, %v914_v45 }
 0x338   : > { %v926_v47 = vsub.f32 %v907_v29, %v922_v59 }
 0x339   : > { %v916_v48 = vpop.xlane.xlu0 %915 }
 0x33a   : > { %v923_v49 = vmul.f32 0.0078125, %v916_v48  ;;  %v930_v50 = vmul.f32 %v926_v47, %v926_v47 }
 0x33c   : > { %v927_v51 = vsub.f32 %v908_v37, %v923_v49  ;;  %934 = vadd.xlane.f32.xlu0 %v930_v50 }
 0x33d   : > { %v918_v52 = vpop.xlane.xlu1 %917 }
 0x33e   : > { %v924_v53 = vmul.f32 0.0078125, %v918_v52  ;;  %v931_v54 = vmul.f32 %v927_v51, %v927_v51 }
 0x340   : > { %v928_v55 = vsub.f32 %v909_v42, %v924_v53  ;;  %936 = vadd.xlane.f32.xlu1 %v931_v54 }
 0x341   : > { %v920_v9 = vpop.xlane.xlu1 %919 }
 0x342   : > { %v925_v56 = vmul.f32 0.0078125, %v920_v9  ;;  %v932_v57 = vmul.f32 %v928_v55, %v928_v55 }
 0x344   : > { %v929_v58 = vsub.f32 %v910_v44, %v925_v56  ;;  %938 = vadd.xlane.f32.xlu0 %v932_v57 }
 0x346   : > { %v933_v22 = vmul.f32 %v929_v58, %v929_v58 }
 0x348   : > { %940 = vadd.xlane.f32.xlu1 %v933_v22 }
 0x3c9   : > { %v935_v60 = vpop.xlane.xlu0 %934 }
 0x3ca   : > { %v942_v61 = vmul.f32 0.0078125, %v935_v60 }
 0x3cc   : > { %v946_v62 = vadd.f32 1e-05, %v942_v61 }
 0x3cd   : > { %v937_v63 = vpop.xlane.xlu1 %936 }
 0x3ce   : > { %1487 = vrsqrt.f32 %v946_v62  ;;  %v943_v1 = vmul.f32 0.0078125, %v937_v63 }
 0x3d0   : > { %v947_v2 = vadd.f32 1e-05, %v943_v1 }
 0x3d1   : > { %v939_v3 = vpop.xlane.xlu0 %938 }
 0x3d2   : > { %1489 = vrsqrt.f32 %v947_v2  ;;  %v944_v4 = vmul.f32 0.0078125, %v939_v3 }
 0x3d4   : > { %v948_v5 = vadd.f32 1e-05, %v944_v4 }
 0x3d5   : > { %v941_v6 = vpop.xlane.xlu1 %940 }
 0x3d6   : > { %1491 = vrsqrt.f32 %v948_v5  ;;  %v945_v7 = vmul.f32 0.0078125, %v941_v6 }
 0x3d8   : > { %v1488_v8 = vpop.eup %1487  ;;  %v949_v11 = vadd.f32 1e-05, %v945_v7 }
 0x3d9   : > { %v954_v12 = vmul.f32 %v1488_v8, %v926_v47 }
 0x3da   : > { %1493 = vrsqrt.f32 %v949_v11 }
 0x3db   : > { %v964_v14 = vmul.f32 %v1148_v10, %v954_v12 }
 0x3dc   : > { %v1490_v15 = vpop.eup %1489 }
 0x3dd   : > { %v974_v16 = vadd.f32 %v1149_v13, %v964_v14  ;;  %v955_v17 = vmul.f32 %v1490_v15, %v927_v51 }
 0x3df   : > { %978 = vst [vmem:[%s375_s8] sm:$0xff] %v974_v16  ;;  %v965_v18 = vmul.f32 %v1148_v10, %v955_v17 }
 0x3e0   : > { %v1492_v19 = vpop.eup %1491 }
 0x3e1   : > { %v975_v20 = vadd.f32 %v1149_v13, %v965_v18  ;;  %v956_v21 = vmul.f32 %v1492_v19, %v928_v55 }
 0x3e3   : > { %979 = vst [vmem:[%s375_s8 + $0x8] sm:$0xff] %v975_v20  ;;  %v966_v23 = vmul.f32 %v1148_v10, %v956_v21 }
 0x3e4   : > { %v1494_v24 = vpop.eup %1493 }
 0x3e5   : > { %v976_v25 = vadd.f32 %v1149_v13, %v966_v23  ;;  %v957_v26 = vmul.f32 %v1494_v24, %v929_v58 }
 0x3e7   : > { %980 = vst [vmem:[%s375_s8 + $0x10] sm:$0xff] %v976_v25  ;;  %v967_v27 = vmul.f32 %v1148_v10, %v957_v26 }
 0x3e9   : > { %v977_v28 = vadd.f32 %v1149_v13, %v967_v27 }
 0x3eb   : > { %981 = vst [vmem:[%s375_s8 + $0x18] sm:$0xff] %v977_v28 }
 0x3ec   : > { %1706 = shalt.err (!%p1703_p8)
}
 0x3ed   : > { %s1707_s19 = scalar_lea.hbm %s2147_s9, 512  ;;  %s1711_s8 = scalar_lea.hbm %s2200_s7, 1024 }
 0x3ee   : > { %p1708_p7 = scmp.ne.s32.totalorder %s2147_s9, %s1707_s19  ;;  %p1712_p3 = scmp.lt.u32.totalorder %s2147_s9, %s2200_s7 }
 0x3ef   : > { %p1713_p0 = scmp.lt.u32.totalorder %s1711_s8, %s1707_s19  ;;  %p1715_p6 = scmp.lt.u32.totalorder %s1707_s19, %s2147_s9 }
 0x3f0   : > { %p1709_p9 = pnand %p1708_p7, %p2222_p5 }
 0x3f1   : > { %p1714_p2 = por %p1713_p0, %p1712_p3 }
 0x3f2   : > { %p1710_p4 = pneg %p1709_p9 }
 0x3f3   : > { %p1716_p10 = por %p1715_p6, %p1714_p2 }
 0x3f5   : > { %p1717_p1 = pnand %p1716_p10, %p1710_p4 }
 0x3f7   : > { %1720 = shalt.err (!%p1717_p1)
}
 0x3f8   : > { %s1786_s28 = smov 128   ;;  %s1787_s15 = smov 8  }
 0x3f9   : > { %1399 = dma.vmem_to_hbm [thread:$0]  (%p2222_p5), %s2149_s23, 512, %s2147_s9, %s983_s29, %s1786_s28, %s1786_s28, %s1787_s15  }
 0x3fa PF: > { %s1011_s30 = sand.u32 1, %s1759_s24   ;;  %p2223_p11 = scmp.ne.s32.totalorder %s2212_s10, 0 }
 0x3fb   : > { %p2224_p12 = scmp.ge.s32.totalorder %s1771_s27, 2  ;;  %s1012_s13 = scalar_lea.sflag [#allocation4], %s1011_s30 }
 0x3fd   : > { %p1425_p13 = pnand %p2224_p12, %p2223_p11 }
 0x3ff   : > { %1754 = dma.done.wait (!%p1425_p13), %s1012_s13, 512  }
 0x400   : > { %1756 = vsyncadd (!%p1425_p13), %s1012_s13, 4294966784  ;;  %p23_p8 = scmp.ge.s32.totalorder %s2003_s11, 4   ;;  %s2225_s24 = smov %s1763_s25 }
 0x401   : > { %s2226_s25 = smov %s1767_s26  ;;  %s2227_s26 = smov %s2014_s17 }
 0x402   : > { %s2228_s27 = smov %s2003_s11  ;;  %25 = sbr.rel (!%p23_p8) target bundleno = 8 (0x8), region = 117 }
 0x409   :  { %1017 = vsyncpa [#allocation3], 1 }
 0x40a   :  { %1019 = vsyncpa [#allocation3 + $0x1], 1 }
 0x40b   :  { %1020 = vsyncpa [#allocation6], 1 }
 0x40c   :  { %1021 = vsyncpa [#allocation9], 1 }
 0x40d   :  { %1022 = vsyncpa [#allocation12], 1 }
 0x40e   :  { %1023 = vsyncpa [#allocation4], 1 }
 0x40f   :  { %1025 = vsyncpa [#allocation4 + $0x1], 1 }

</bundles_post_ra>
